<compile_context>
chip_gen: v6e
topology: v6e:2x2x1
jax: 0.10.0
libtpu: 0.0.40
codegen_flags: <defaults>
</compile_context>

<pallas_src>
import functools

import jax
import jax.numpy as jnp
from jax.experimental import pallas as pl
from jax.experimental.pallas import tpu as pltpu

_LANE = 128
_SUBLANE = 8


def _round_up(n, m):
    return (n + m - 1) // m * m


def _decoder_kernel(x_ref, w1_ref, b1_ref, w2_ref, b2_ref, o_ref):
    # First linear: [tm, Kp] @ [Kp, Hp] + [1, Hp]  (f32 MXU accumulation).
    h = jnp.dot(x_ref[...], w1_ref[...], preferred_element_type=jnp.float32)
    h = h + b1_ref[...].astype(jnp.float32)
    # LeakyReLU (PyTorch default negative_slope = 0.01), f32 on the VPU.
    h = jnp.where(h > 0, h, 0.01 * h)
    # Second linear: [tm, Hp] @ [Hp, Op] + [1, Op].
    out = jnp.dot(h.astype(w2_ref.dtype), w2_ref[...],
                  preferred_element_type=jnp.float32)
    out = out + b2_ref[...].astype(jnp.float32)
    o_ref[...] = out.astype(o_ref.dtype)


@functools.partial(jax.jit, static_argnames=("block_rows",))
def decoder_forward(x, w1, b1, w2, b2, block_rows=256):
    B, in_dim = x.shape
    hidden_dim = w1.shape[1]
    out_dim = w2.shape[1]

    # Pad feature dims to 128 lanes so loads/stores are lane-dense.
    in_p = _round_up(in_dim, _LANE)
    hid_p = _round_up(hidden_dim, _LANE)
    out_p = _round_up(out_dim, _LANE)

    dt = x.dtype
    x_p = jnp.pad(x, ((0, 0), (0, in_p - in_dim)))
    w1_p = jnp.pad(w1, ((0, in_p - in_dim), (0, hid_p - hidden_dim)))
    b1_p = jnp.pad(b1.reshape(1, -1), ((0, 0), (0, hid_p - hidden_dim)))
    w2_p = jnp.pad(w2, ((0, hid_p - hidden_dim), (0, out_p - out_dim)))
    b2_p = jnp.pad(b2.reshape(1, -1), ((0, 0), (0, out_p - out_dim)))

    bytes_per_elem = int(jnp.dtype(dt).itemsize)
    cost = pl.CostEstimate(
        flops=int(2 * B * (in_p * hid_p + hid_p * out_p)),
        transcendentals=0,
        bytes_accessed=int(bytes_per_elem * (B * in_p + in_p * hid_p + hid_p
                                             + hid_p * out_p + out_p
                                             + B * out_p)),
    )

    if B <= block_rows:
        # Single-shot: no grid, no pipeline machinery; everything VMEM-resident.
        b_p = _round_up(B, _SUBLANE)
        x_p = jnp.pad(x_p, ((0, b_p - B), (0, 0)))
        out_padded = pl.pallas_call(
            _decoder_kernel,
            out_shape=jax.ShapeDtypeStruct((b_p, out_p), dt),
            in_specs=[pl.BlockSpec(memory_space=pltpu.MemorySpace.VMEM)] * 5,
            out_specs=pl.BlockSpec(memory_space=pltpu.MemorySpace.VMEM),
            cost_estimate=cost,
        )(x_p, w1_p, b1_p, w2_p, b2_p)
        out_padded = out_padded[:B]
    else:
        # Batched path: stream x/out over a "parallel" batch grid axis,
        # weights/biases DMA'd once (constant index_map) and kept resident.
        b_p = _round_up(B, block_rows)
        x_p = jnp.pad(x_p, ((0, b_p - B), (0, 0)))
        out_padded = pl.pallas_call(
            _decoder_kernel,
            out_shape=jax.ShapeDtypeStruct((b_p, out_p), dt),
            grid_spec=pltpu.PrefetchScalarGridSpec(
                num_scalar_prefetch=0,
                grid=(b_p // block_rows,),
                in_specs=[
                    pl.BlockSpec((block_rows, in_p), lambda i: (i, 0)),
                    pl.BlockSpec((in_p, hid_p), lambda i: (0, 0)),
                    pl.BlockSpec((1, hid_p), lambda i: (0, 0)),
                    pl.BlockSpec((hid_p, out_p), lambda i: (0, 0)),
                    pl.BlockSpec((1, out_p), lambda i: (0, 0)),
                ],
                out_specs=pl.BlockSpec((block_rows, out_p), lambda i: (i, 0)),
            ),
            compiler_params=pltpu.CompilerParams(
                dimension_semantics=("parallel",)),
            cost_estimate=cost,
        )(x_p, w1_p, b1_p, w2_p, b2_p)
        out_padded = out_padded[:B]

    return out_padded[:, :out_dim]


def init_decoder_params(key, hidden_dim, out_dim, dtype=jnp.float32):
    """Deterministic init mimicking nn.Linear's uniform(-1/sqrt(fan_in), ...)."""
    k1, k2, k3, k4 = jax.random.split(key, 4)
    in_dim = 2 * hidden_dim
    lim1 = 1.0 / float(jnp.sqrt(in_dim))
    lim2 = 1.0 / float(jnp.sqrt(hidden_dim))
    w1 = jax.random.uniform(k1, (in_dim, hidden_dim), dtype, -lim1, lim1)
    b1 = jax.random.uniform(k2, (hidden_dim,), dtype, -lim1, lim1)
    w2 = jax.random.uniform(k3, (hidden_dim, out_dim), dtype, -lim2, lim2)
    b2 = jax.random.uniform(k4, (out_dim,), dtype, -lim2, lim2)
    return w1, b1, w2, b2


def decoder_reference(x, w1, b1, w2, b2):
    h = x @ w1 + b1[None, :]
    h = jnp.where(h > 0, h, 0.01 * h)
    return h @ w2 + b2[None, :]


if __name__ == "__main__":
    # Small shapes consistent with the module: hidden_dim=32, out_dim=16.
    hidden_dim = 32
    out_dim = 16

    key = jax.random.PRNGKey(0)
    kx, kx2, kp = jax.random.split(key, 3)
    w1, b1, w2, b2 = init_decoder_params(kp, hidden_dim, out_dim)

    # --- small-batch path (no grid, whole-array VMEM) ---
    batch = 8
    x = jax.random.normal(kx, (batch, 2 * hidden_dim), dtype=jnp.float32)
    out = jax.block_until_ready(decoder_forward(x, w1, b1, w2, b2))
    ref = decoder_reference(x, w1, b1, w2, b2)
    assert out.shape == (batch, out_dim)
    assert jnp.allclose(out, ref, atol=1e-5, rtol=1e-5)

    # --- batched path (parallel grid over batch tiles, resident weights) ---
    big_batch = 512
    xb = jax.random.normal(kx2, (big_batch, 2 * hidden_dim), dtype=jnp.float32)
    outb = jax.block_until_ready(decoder_forward(xb, w1, b1, w2, b2))
    refb = decoder_reference(xb, w1, b1, w2, b2)
    assert outb.shape == (big_batch, out_dim)
    assert jnp.allclose(outb, refb, atol=1e-5, rtol=1e-5)

    print("KERNEL_OK")
</pallas_src>

<mosaic_0001>
module attributes {stable_mosaic.version = 11 : i64} {
  func.func @_decoder_kernel(%arg0: memref<8x128xf32, #tpu.memory_space<vmem>>, %arg1: memref<128x128xf32, #tpu.memory_space<vmem>>, %arg2: memref<1x128xf32, #tpu.memory_space<vmem>>, %arg3: memref<128x128xf32, #tpu.memory_space<vmem>>, %arg4: memref<1x128xf32, #tpu.memory_space<vmem>>, %arg5: memref<8x128xf32, #tpu.memory_space<vmem>>) attributes {dimension_semantics = [], scalar_prefetch = 0 : i64, scratch_operands = 0 : i64, tpu.core_type = #tpu.core_type<tc>} {
    %c0 = arith.constant 0 : index
    %c0_0 = arith.constant 0 : index
    %0 = vector.load %arg0[%c0, %c0_0] : memref<8x128xf32, #tpu.memory_space<vmem>>, vector<8x128xf32>
    %c0_1 = arith.constant 0 : index
    %c0_2 = arith.constant 0 : index
    %1 = vector.load %arg1[%c0_1, %c0_2] : memref<128x128xf32, #tpu.memory_space<vmem>>, vector<128x128xf32>
    %cst = arith.constant dense<0.000000e+00> : vector<8x128xf32>
    %2 = tpu.matmul %0, %1, %cst {dimension_numbers = #tpu.dot_dimension_numbers<[1], [0], [0], [1], [0, 0, 1, 1], [], []>} : vector<8x128xf32>, vector<128x128xf32>, vector<8x128xf32> -> vector<8x128xf32>
    %c0_3 = arith.constant 0 : index
    %c0_4 = arith.constant 0 : index
    %3 = vector.load %arg2[%c0_3, %c0_4] : memref<1x128xf32, #tpu.memory_space<vmem>>, vector<1x128xf32>
    %4 = vector.broadcast %3 : vector<1x128xf32> to vector<8x128xf32>
    %5 = arith.addf %2, %4 : vector<8x128xf32>
    %cst_5 = arith.constant 0.000000e+00 : f32
    %6 = vector.broadcast %cst_5 : f32 to vector<8x128xf32>
    %7 = arith.cmpf ogt, %5, %6 : vector<8x128xf32>
    %cst_6 = arith.constant 0.00999999977 : f32
    %8 = vector.broadcast %cst_6 : f32 to vector<8x128xf32>
    %9 = arith.mulf %8, %5 : vector<8x128xf32>
    %10 = arith.select %7, %5, %9 : vector<8x128xi1>, vector<8x128xf32>
    %c0_7 = arith.constant 0 : index
    %c0_8 = arith.constant 0 : index
    %11 = vector.load %arg3[%c0_7, %c0_8] : memref<128x128xf32, #tpu.memory_space<vmem>>, vector<128x128xf32>
    %cst_9 = arith.constant dense<0.000000e+00> : vector<8x128xf32>
    %12 = tpu.matmul %10, %11, %cst_9 {dimension_numbers = #tpu.dot_dimension_numbers<[1], [0], [0], [1], [0, 0, 1, 1], [], []>} : vector<8x128xf32>, vector<128x128xf32>, vector<8x128xf32> -> vector<8x128xf32>
    %c0_10 = arith.constant 0 : index
    %c0_11 = arith.constant 0 : index
    %13 = vector.load %arg4[%c0_10, %c0_11] : memref<1x128xf32, #tpu.memory_space<vmem>>, vector<1x128xf32>
    %14 = vector.broadcast %13 : vector<1x128xf32> to vector<8x128xf32>
    %15 = arith.addf %12, %14 : vector<8x128xf32>
    %c0_12 = arith.constant 0 : index
    %c0_13 = arith.constant 0 : index
    %16 = vector.load %arg5[%c0_12, %c0_13] : memref<8x128xf32, #tpu.memory_space<vmem>>, vector<8x128xf32>
    tpu.vector_store %arg5[%c0_12, %c0_13], %15 {strides = array<i32>} : memref<8x128xf32, #tpu.memory_space<vmem>>, vector<8x128xf32>,
    return
  }
}

</mosaic_0001>

<bundles_post_ra>
// kernel: decoder_forward.1
= control target key start
LH: loop header
LB: loop body
LE: loop exit
PB: predicated region body
PF: predicated region fallthrough
CT: control target
= control target key end

     0   :  { %v357_v1 = vmov 0.0   ;;  %vm358_vm0 = vmmov 0   ;;  %s532_s0 = inlined_call_operand.vmem [shape: f32[8,128], index: 0, kind: input, shape index: {}]   ;;  %s533_s1 = inlined_call_operand.vmem [shape: f32[128,128], index: 1, kind: input, shape index: {}]   ;;  %s534_s2 = inlined_call_operand.vmem [shape: f32[1,128], index: 2, kind: input, shape index: {}]   ;;  %s535_s3 = inlined_call_operand.vmem [shape: f32[128,128], index: 3, kind: input, shape index: {}]   ;;  %s536_s4 = inlined_call_operand.vmem [shape: f32[1,128], index: 4, kind: input, shape index: {}]   ;;  %s537_s5 = inlined_call_operand.hbm [shape: f32[8,128], index: 5, kind: output, shape index: {}]  }
   0x1   :  { %v37_v0 = vld [vmem:[%s533_s1 + $0x78] sm:$0xff]  ;;  %262 = vmatprep.subr.mxu0 %v357_v1  ;;  %v36_v2 = vld [vmem:[%s533_s1 + $0x70] sm:$0xff]  ;;  %294 = vmatprep.mubr.msk.f32.mxu0 %vm358_vm0, %v357_v1  ;;  %v35_v3 = vld [vmem:[%s533_s1 + $0x68] sm:$0xff] }
   0x2   :  { %263 = vmatpush3.msra.mxu0 %v37_v0  ;;  %297 = vmatprep.subr.mxu1 %v357_v1  ;;  %v34_v4 = vld [vmem:[%s533_s1 + $0x60] sm:$0xff]  ;;  %v133_v5 = vld [vmem:[%s535_s3 + $0x78] sm:$0xff]  ;;  %v132_v6 = vld [vmem:[%s535_s3 + $0x70] sm:$0xff] }
   0x3   :  { %264 = vmatprep.subr.mxu0 %v357_v1  ;;  %329 = vmatprep.mubr.msk.f32.mxu1 %vm358_vm0, %v357_v1  ;;  %v33_v7 = vld [vmem:[%s533_s1 + $0x58] sm:$0xff]  ;;  %v131_v8 = vld [vmem:[%s535_s3 + $0x68] sm:$0xff]  ;;  %v32_v9 = vld [vmem:[%s533_s1 + $0x50] sm:$0xff] }
   0x4   :  { %265 = vmatpush3.msra.mxu0 %v36_v2  ;;  %298 = vmatpush3.msra.mxu1 %v133_v5  ;;  %v130_v10 = vld [vmem:[%s535_s3 + $0x60] sm:$0xff] }
   0x5   :  { %266 = vmatprep.subr.mxu0 %v357_v1  ;;  %299 = vmatprep.subr.mxu1 %v357_v1 }
   0x6   :  { %267 = vmatpush3.msra.mxu0 %v35_v3  ;;  %300 = vmatpush3.msra.mxu1 %v132_v6 }
   0x7   :  { %268 = vmatprep.subr.mxu0 %v357_v1  ;;  %301 = vmatprep.subr.mxu1 %v357_v1 }
   0x8   :  { %269 = vmatpush3.msra.mxu0 %v34_v4  ;;  %302 = vmatpush3.msra.mxu1 %v131_v8 }
   0x9   :  { %270 = vmatprep.subr.mxu0 %v357_v1 }
   0xa   :  { %271 = vmatpush3.msra.mxu0 %v33_v7 }
   0xb   :  { %10 = vsyncpa [#allocation3], 0  ;;  %272 = vmatprep.subr.mxu0 %v357_v1  ;;  %v31_v11 = vld [vmem:[%s533_s1 + $0x48] sm:$0xff]  ;;  %303 = vmatprep.subr.mxu1 %v357_v1  ;;  %v129_v12 = vld [vmem:[%s535_s3 + $0x58] sm:$0xff]  ;;  %s359_s11 = smov [#allocation2]  }
   0xc   :  { %273 = vmatpush3.msra.mxu0 %v32_v9  ;;  %304 = vmatpush3.msra.mxu1 %v130_v10  ;;  %v30_v13 = vld [vmem:[%s533_s1 + $0x40] sm:$0xff]  ;;  %v128_v14 = vld [vmem:[%s535_s3 + $0x50] sm:$0xff]  ;;  %v29_v15 = vld [vmem:[%s533_s1 + $0x38] sm:$0xff] }
   0xd   :  { %274 = vmatprep.subr.mxu0 %v357_v1  ;;  %305 = vmatprep.subr.mxu1 %v357_v1  ;;  %v127_v16 = vld [vmem:[%s535_s3 + $0x48] sm:$0xff]  ;;  %v28_v17 = vld [vmem:[%s533_s1 + $0x30] sm:$0xff]  ;;  %v126_v18 = vld [vmem:[%s535_s3 + $0x40] sm:$0xff] }
   0xe   :  { %275 = vmatpush3.msra.mxu0 %v31_v11  ;;  %306 = vmatpush3.msra.mxu1 %v129_v12  ;;  %v27_v19 = vld [vmem:[%s533_s1 + $0x28] sm:$0xff]  ;;  %v125_v20 = vld [vmem:[%s535_s3 + $0x38] sm:$0xff]  ;;  %v26_v21 = vld [vmem:[%s533_s1 + $0x20] sm:$0xff] }
   0xf   :  { %276 = vmatprep.subr.mxu0 %v357_v1  ;;  %307 = vmatprep.subr.mxu1 %v357_v1  ;;  %v124_v22 = vld [vmem:[%s535_s3 + $0x30] sm:$0xff]  ;;  %v25_v23 = vld [vmem:[%s533_s1 + $0x18] sm:$0xff]  ;;  %v123_v24 = vld [vmem:[%s535_s3 + $0x28] sm:$0xff] }
  0x10   :  { %277 = vmatpush3.msra.mxu0 %v30_v13  ;;  %308 = vmatpush3.msra.mxu1 %v128_v14  ;;  %v24_v25 = vld [vmem:[%s533_s1 + $0x10] sm:$0xff]  ;;  %v122_v26 = vld [vmem:[%s535_s3 + $0x20] sm:$0xff]  ;;  %v23_v27 = vld [vmem:[%s533_s1 + $0x8] sm:$0xff] }
  0x11   :  { %278 = vmatprep.subr.mxu0 %v357_v1  ;;  %309 = vmatprep.subr.mxu1 %v357_v1  ;;  %v121_v28 = vld [vmem:[%s535_s3 + $0x18] sm:$0xff]  ;;  %v22_v29 = vld [vmem:[%s533_s1] sm:$0xff]  ;;  %v120_v31 = vld [vmem:[%s535_s3 + $0x10] sm:$0xff] }
  0x12   :  { %279 = vmatpush3.msra.mxu0 %v29_v15  ;;  %310 = vmatpush3.msra.mxu1 %v127_v16  ;;  %v21_v30 = vld [vmem:[%s532_s0] sm:$0xff]  ;;  %v119_v32 = vld [vmem:[%s535_s3 + $0x8] sm:$0xff] }
  0x13   :  { %280 = vmatprep.subr.mxu0 %v357_v1  ;;  %311 = vmatprep.subr.mxu1 %v357_v1  ;;  %v118_v33 = vld [vmem:[%s535_s3] sm:$0xff]  ;;  %s218_s3 = sshll.u32 %s359_s11, 4  ;;  %s219_s3 = int_to_ptr.vmem [resolvable:$true] %s218_s3 }
  0x14   :  { %281 = vmatpush3.msra.mxu0 %v28_v17  ;;  %312 = vmatpush3.msra.mxu1 %v126_v18  ;;  %v226_v34 = vld [vmem:[%s534_s2] ss:$0 sm:$0xff]  ;;  %s335_s12 = scalar_lea.vmem %s219_s3, 128  ;;  %p340_p1 = scmp.lt.s32.totalorder %s219_s3, %s219_s3 }
  0x15   :  { %282 = vmatprep.subr.mxu0 %v357_v1  ;;  %313 = vmatprep.subr.mxu1 %v357_v1  ;;  %v227_v40 = vld [vmem:[%s536_s4] ss:$0 sm:$0xff]  ;;  %p336_p0 = scmp.ne.s32.totalorder %s219_s3, %s335_s12  ;;  %p341_p2 = scmp.lt.s32.totalorder %s335_s12, %s335_s12 }
  0x16   :  { %283 = vmatpush3.msra.mxu0 %v27_v19  ;;  %314 = vmatpush3.msra.mxu1 %v125_v20 }
  0x17   :  { %284 = vmatprep.subr.mxu0 %v357_v1  ;;  %315 = vmatprep.subr.mxu1 %v357_v1  ;;  %p342_p3 = por %p341_p2, %p340_p1 }
  0x18   :  { %285 = vmatpush3.msra.mxu0 %v26_v21  ;;  %316 = vmatpush3.msra.mxu1 %v124_v22 }
  0x19   :  { %286 = vmatprep.subr.mxu0 %v357_v1  ;;  %317 = vmatprep.subr.mxu1 %v357_v1  ;;  %p343_p4 = pnand %p342_p3, %p336_p0 }
  0x1a   :  { %287 = vmatpush3.msra.mxu0 %v25_v23  ;;  %318 = vmatpush3.msra.mxu1 %v123_v24 }
  0x1b   :  { %288 = vmatprep.subr.mxu0 %v357_v1  ;;  %319 = vmatprep.subr.mxu1 %v357_v1 }
  0x1c   :  { %289 = vmatpush3.msra.mxu0 %v24_v25  ;;  %320 = vmatpush3.msra.mxu1 %v122_v26 }
  0x1d   :  { %290 = vmatprep.subr.mxu0 %v357_v1  ;;  %321 = vmatprep.subr.mxu1 %v357_v1 }
  0x1e   :  { %291 = vmatpush3.msra.mxu0 %v23_v27  ;;  %322 = vmatpush3.msra.mxu1 %v121_v28 }
  0x1f   :  { %292 = vmatprep.subr.mxu0 %v357_v1  ;;  %323 = vmatprep.subr.mxu1 %v357_v1 }
  0x20   :  { %293 = vmatpush3.msra.mxu0 %v22_v29  ;;  %324 = vmatpush3.msra.mxu1 %v120_v31 }
  0x21   :  { %295 = vmatmul.mubr.f32.vlgmr.msra.gmra.mxu0 %v21_v30  ;;  %325 = vmatprep.subr.mxu1 %v357_v1 }
  0x22   :  { %326 = vmatpush3.msra.mxu1 %v119_v32 }
  0x23   :  { %327 = vmatprep.subr.mxu1 %v357_v1 }
  0x24   :  { %328 = vmatpush3.msra.mxu1 %v118_v33 }
  0xe1   :  { %v111_v35 = vpop.f32.mrf.mxu0 }
  0xe2   :  { %v112_v36 = vadd.f32 %v226_v34, %v111_v35 }
  0xe3   :  { %v296_v37 = vpop.f32.mrf.mxu0 }
  0xe4   :  { %v116_v38 = vmul.f32 0.01, %v112_v36  ;;  %vm115_vm1 = vcmp.gt.f32.partialorder %v112_v36, 0.0 }
  0xe6   :  { %v117_v39 = vsel %vm115_vm1, %v112_v36, %v116_v38 }
  0xe7   :  { %330 = vmatmul.mubr.f32.vlgmr.msra.gmra.mxu1 %v117_v39 }
 0x1a7   :  { %v207_v41 = vpop.f32.mrf.mxu1 }
 0x1a8   :  { %v208_v42 = vadd.f32 %v227_v40, %v207_v41 }
 0x1a9   :  { %v331_v43 = vpop.f32.mrf.mxu1 }
 0x1aa   :  { %211 = vst [vmem:[#allocation2] sm:$0xff] %v208_v42 }
 0x1ab   :  { %346 = shalt.err (!%p343_p4)
}
 0x1ac   :  { %221 = dma.vmem_to_hbm [thread:$0]  %s219_s3, 128, %s537_s5, [#allocation3]  }
 0x1ad   :  { %355 = dma.done.wait [#allocation3], 128  }
 0x1ae   :  { %356 = vsyncadd [#allocation3], 4294967168 }
 0x1af   :  { %225 = vsyncpa [#allocation3], 1 }

</bundles_post_ra>
